<compile_context>
chip_gen: v7x
topology: tpu7x:2x2x1
jax: 0.10.0
libtpu: 0.0.40
codegen_flags: <defaults>
</compile_context>

<pallas_src>
import jax
import jax.numpy as jnp
from jax import lax
from jax.experimental import pallas as pl
from jax.experimental.pallas import tpu as pltpu

_EPS = 1e-8  # F.cosine_similarity default eps


def _linkpred_kernel(zs_ref, zd_ref, slab_ref, bf_ref, o_ref):
    # zs_ref : (N, C)        raw z_src tile
    # zd_ref : (N, C)        raw z_dst tile
    # slab_ref: (2C + 8, C)  [W_src^T ; W_dst^T ; extras(8,C)]
    #            extras row 0 = b_src, row 1 = b_dst, row 2 = w_final, rest 0
    # bf_ref : (1,) SMEM     lin_final bias
    # o_ref  : (1, 1)
    c = zs_ref.shape[1]

    w_src_t = slab_ref[0:c, :]            # (C, C) = W_src^T   (8-aligned slice)
    w_dst_t = slab_ref[c:2 * c, :]        # (C, C) = W_dst^T
    extras = slab_ref[2 * c:2 * c + 8, :]  # (8, C) single aligned block load
    b_src = extras[0:1, :]                # (1, C) value-level slices (free)
    b_dst = extras[1:2, :]
    wf = extras[2:3, :]                   # (1, C) lin_final weight (N == C)

    # Two clean 32x32x32 MXU matmuls; bias adds ride the idle VPU slots.
    h_src = jnp.dot(zs_ref[...], w_src_t,
                    preferred_element_type=jnp.float32) + b_src   # (N, C)
    h_dst = jnp.dot(zd_ref[...], w_dst_t,
                    preferred_element_type=jnp.float32) + b_dst   # (N, C)

    # cosine_similarity over the feature (lane) axis, ATen formula:
    #   w12 / sqrt(clamp_min(w1 * w2, eps^2))
    w12 = jnp.sum(h_src * h_dst, axis=1, keepdims=True)           # (N, 1)
    w1 = jnp.sum(h_src * h_src, axis=1, keepdims=True)            # (N, 1)
    w2 = jnp.sum(h_dst * h_dst, axis=1, keepdims=True)            # (N, 1)
    cos = w12 * lax.rsqrt(jnp.maximum(w1 * w2, _EPS * _EPS))      # (N, 1), EUP

    # lin_final on the 1-D cosine vector (N == C): tiny vector-matrix dot.
    out = jnp.dot(wf, cos, preferred_element_type=jnp.float32)    # (1, 1)
    o_ref[...] = out + bf_ref[0]


def prepare_params(params):
    """One-time packing of param-derived operands (do NOT call per forward)."""
    f32 = jnp.float32
    c = params["w_src"].shape[0]
    extras = jnp.zeros((8, c), f32)
    extras = extras.at[0].set(params["b_src"].astype(f32))
    extras = extras.at[1].set(params["b_dst"].astype(f32))
    extras = extras.at[2].set(params["w_final"].reshape(c).astype(f32))
    slab = jnp.concatenate(
        [params["w_src"].T.astype(f32),   # rows 0..C-1  : W_src^T
         params["w_dst"].T.astype(f32),   # rows C..2C-1 : W_dst^T
         extras],                         # rows 2C..2C+7: biases + w_final
        axis=0)                           # (2C + 8, C)
    bf = params["b_final"].reshape(1).astype(f32)
    return {"slab": slab, "b_final": bf}


def _cost_estimate(n, c, batch=1):
    flops = batch * (2 * 2 * n * c * c   # two (N,C)x(C,C) matmuls
                     + 8 * n * c         # bias adds + cosine elementwise
                     + 2 * n)            # final (1,N)x(N,1) dot
    bytes_acc = (batch * (2 * n * c * 4 + 4)     # z_src, z_dst, out
                 + (2 * c + 8) * c * 4 + 4)      # slab, b_final
    return pl.CostEstimate(flops=flops, transcendentals=batch * n,
                           bytes_accessed=bytes_acc)


def link_predictor_forward(z_src, z_dst, prepared):
    """Single pair-batch forward. z_src, z_dst: (N, C) f32, N == C. -> (1,)."""
    n, c = z_src.shape
    assert z_dst.shape == (n, c)
    assert n == c, ("PyTorch lin_final(Linear(C,1)) applied to the 1-D cosine "
                    "vector requires N == C")
    slab, bf = prepared["slab"], prepared["b_final"]

    full = lambda shape: pl.BlockSpec(shape, lambda: (0,) * len(shape))
    out = pl.pallas_call(
        _linkpred_kernel,
        out_shape=jax.ShapeDtypeStruct((1, 1), jnp.float32),
        grid=(),
        in_specs=[
            full((n, c)),                                       # z_src (raw)
            full((n, c)),                                       # z_dst (raw)
            full((2 * c + 8, c)),                               # packed slab
            pl.BlockSpec(memory_space=pltpu.MemorySpace.SMEM),  # b_final
        ],
        out_specs=full((1, 1)),
        cost_estimate=_cost_estimate(n, c),
    )(z_src, z_dst, slab, bf)
    return out.reshape(1)  # matches PyTorch output shape (1,)


def link_predictor_forward_batched(z_src, z_dst, prepared):
    """Batched forward. z_src, z_dst: (B, N, C) f32, N == C. -> (B, 1)."""
    b, n, c = z_src.shape
    assert z_dst.shape == (b, n, c)
    assert n == c
    slab, bf = prepared["slab"], prepared["b_final"]

    out = pl.pallas_call(
        _linkpred_kernel,
        out_shape=jax.ShapeDtypeStruct((b, 1, 1), jnp.float32),
        grid=(b,),
        in_specs=[
            pl.BlockSpec((None, n, c), lambda i: (i, 0, 0)),    # z_src[i]
            pl.BlockSpec((None, n, c), lambda i: (i, 0, 0)),    # z_dst[i]
            pl.BlockSpec((2 * c + 8, c), lambda i: (0, 0)),     # shared slab
            pl.BlockSpec(memory_space=pltpu.MemorySpace.SMEM),  # b_final
        ],
        out_specs=pl.BlockSpec((None, 1, 1), lambda i: (i, 0, 0)),
        compiler_params=pltpu.CompilerParams(
            dimension_semantics=("parallel",)),  # 2 TCs on v7x
        cost_estimate=_cost_estimate(n, c, batch=b),
    )(z_src, z_dst, slab, bf)
    return out.reshape(b, 1)


def init_params(key, in_channels):
    """Deterministic init mimicking nn.Linear default (uniform +/- 1/sqrt(fan_in))."""
    c = in_channels
    bound = 1.0 / jnp.sqrt(jnp.float32(c))
    ks = jax.random.split(key, 6)
    u = lambda k, shape: jax.random.uniform(k, shape, jnp.float32, -bound, bound)
    return {
        "w_src": u(ks[0], (c, c)),
        "b_src": u(ks[1], (c,)),
        "w_dst": u(ks[2], (c, c)),
        "b_dst": u(ks[3], (c,)),
        "w_final": u(ks[4], (1, c)),
        "b_final": u(ks[5], (1,)),
    }


def _reference(z_src, z_dst, params):
    # Pure-JAX reference of the exact PyTorch forward.
    h_src = z_src @ params["w_src"].T + params["b_src"]
    h_dst = z_dst @ params["w_dst"].T + params["b_dst"]
    w12 = jnp.sum(h_src * h_dst, axis=1)
    w1 = jnp.sum(h_src * h_src, axis=1)
    w2 = jnp.sum(h_dst * h_dst, axis=1)
    cos = w12 / jnp.sqrt(jnp.maximum(w1 * w2, _EPS * _EPS))
    return cos @ params["w_final"].T + params["b_final"]


if __name__ == "__main__":
    C = 32          # in_channels
    N = C           # number of (src, dst) pairs; must equal C (see note above)
    B = 4           # batch of independent problems for the batched path

    key = jax.random.PRNGKey(0)
    k_src, k_dst, k_par, k_bsrc, k_bdst = jax.random.split(key, 5)
    z_src = jax.random.normal(k_src, (N, C), jnp.float32)
    z_dst = jax.random.normal(k_dst, (N, C), jnp.float32)
    params = init_params(k_par, C)
    prepared = prepare_params(params)   # one-time, hoisted out of per-call path

    # --- single-pair-batch forward (matches the PyTorch module exactly) ---
    fwd = jax.jit(link_predictor_forward)
    out = fwd(z_src, z_dst, prepared)
    jax.block_until_ready(out)
    ref = _reference(z_src, z_dst, params)
    assert out.shape == (1,)
    assert jnp.allclose(out, ref, rtol=1e-5, atol=1e-5), (out, ref)

    # --- batched forward (throughput path; parallel grid axis) ---
    zb_src = jax.random.normal(k_bsrc, (B, N, C), jnp.float32)
    zb_dst = jax.random.normal(k_bdst, (B, N, C), jnp.float32)
    fwd_b = jax.jit(link_predictor_forward_batched)
    out_b = fwd_b(zb_src, zb_dst, prepared)
    jax.block_until_ready(out_b)
    ref_b = jax.vmap(_reference, in_axes=(0, 0, None))(zb_src, zb_dst, params)
    assert out_b.shape == (B, 1)
    assert jnp.allclose(out_b, ref_b, rtol=1e-5, atol=1e-5), (out_b, ref_b)

    print("KERNEL_OK")
</pallas_src>

<mosaic_0001>
module attributes {stable_mosaic.version = 11 : i64} {
  func.func @_linkpred_kernel(%arg0: memref<32x32xf32, #tpu.memory_space<vmem>>, %arg1: memref<32x32xf32, #tpu.memory_space<vmem>>, %arg2: memref<72x32xf32, #tpu.memory_space<vmem>>, %arg3: memref<1xf32, #tpu.memory_space<smem>>, %arg4: memref<1x1xf32, #tpu.memory_space<vmem>>) attributes {dimension_semantics = [], scalar_prefetch = 0 : i64, scratch_operands = 0 : i64, tpu.core_type = #tpu.core_type<tc>} {
    %c0 = arith.constant 0 : index
    %c0_0 = arith.constant 0 : index
    %0 = vector.load %arg2[%c0, %c0_0] : memref<72x32xf32, #tpu.memory_space<vmem>>, vector<32x32xf32>
    %c32 = arith.constant 32 : index
    %c0_1 = arith.constant 0 : index
    %1 = vector.load %arg2[%c32, %c0_1] : memref<72x32xf32, #tpu.memory_space<vmem>>, vector<32x32xf32>
    %c64 = arith.constant 64 : index
    %c0_2 = arith.constant 0 : index
    %2 = vector.load %arg2[%c64, %c0_2] : memref<72x32xf32, #tpu.memory_space<vmem>>, vector<8x32xf32>
    %3 = vector.extract_strided_slice %2 {offsets = [0, 0], sizes = [1, 32], strides = [1, 1]} : vector<8x32xf32> to vector<1x32xf32>
    %4 = vector.extract_strided_slice %2 {offsets = [1, 0], sizes = [1, 32], strides = [1, 1]} : vector<8x32xf32> to vector<1x32xf32>
    %5 = vector.extract_strided_slice %2 {offsets = [2, 0], sizes = [1, 32], strides = [1, 1]} : vector<8x32xf32> to vector<1x32xf32>
    %c0_3 = arith.constant 0 : index
    %c0_4 = arith.constant 0 : index
    %6 = vector.load %arg0[%c0_3, %c0_4] : memref<32x32xf32, #tpu.memory_space<vmem>>, vector<32x32xf32>
    %cst = arith.constant dense<0.000000e+00> : vector<32x32xf32>
    %7 = tpu.matmul %6, %0, %cst {dimension_numbers = #tpu.dot_dimension_numbers<[1], [0], [0], [1], [0, 0, 1, 1], [], []>} : vector<32x32xf32>, vector<32x32xf32>, vector<32x32xf32> -> vector<32x32xf32>
    %8 = vector.broadcast %3 : vector<1x32xf32> to vector<32x32xf32>
    %9 = arith.addf %7, %8 : vector<32x32xf32>
    %c0_5 = arith.constant 0 : index
    %c0_6 = arith.constant 0 : index
    %10 = vector.load %arg1[%c0_5, %c0_6] : memref<32x32xf32, #tpu.memory_space<vmem>>, vector<32x32xf32>
    %cst_7 = arith.constant dense<0.000000e+00> : vector<32x32xf32>
    %11 = tpu.matmul %10, %1, %cst_7 {dimension_numbers = #tpu.dot_dimension_numbers<[1], [0], [0], [1], [0, 0, 1, 1], [], []>} : vector<32x32xf32>, vector<32x32xf32>, vector<32x32xf32> -> vector<32x32xf32>
    %12 = vector.broadcast %4 : vector<1x32xf32> to vector<32x32xf32>
    %13 = arith.addf %11, %12 : vector<32x32xf32>
    %14 = arith.mulf %9, %13 : vector<32x32xf32>
    %cst_8 = arith.constant dense<0.000000e+00> : vector<32xf32>
    %15 = vector.multi_reduction <add>, %14, %cst_8 [1] : vector<32x32xf32> to vector<32xf32>
    %16 = vector.shape_cast %15 : vector<32xf32> to vector<32x1xf32>
    %17 = arith.mulf %9, %9 : vector<32x32xf32>
    %cst_9 = arith.constant dense<0.000000e+00> : vector<32xf32>
    %18 = vector.multi_reduction <add>, %17, %cst_9 [1] : vector<32x32xf32> to vector<32xf32>
    %19 = vector.shape_cast %18 : vector<32xf32> to vector<32x1xf32>
    %20 = arith.mulf %13, %13 : vector<32x32xf32>
    %cst_10 = arith.constant dense<0.000000e+00> : vector<32xf32>
    %21 = vector.multi_reduction <add>, %20, %cst_10 [1] : vector<32x32xf32> to vector<32xf32>
    %22 = vector.shape_cast %21 : vector<32xf32> to vector<32x1xf32>
    %23 = arith.mulf %19, %22 : vector<32x1xf32>
    %cst_11 = arith.constant 1.000000e-16 : f32
    %24 = vector.broadcast %cst_11 : f32 to vector<32x1xf32>
    %25 = arith.maximumf %23, %24 : vector<32x1xf32>
    %26 = math.rsqrt %25 : vector<32x1xf32>
    %27 = arith.mulf %16, %26 : vector<32x1xf32>
    %cst_12 = arith.constant dense<0.000000e+00> : vector<1x1xf32>
    %28 = tpu.matmul %5, %27, %cst_12 {dimension_numbers = #tpu.dot_dimension_numbers<[1], [0], [0], [1], [0, 0, 1, 1], [], []>} : vector<1x32xf32>, vector<32x1xf32>, vector<1x1xf32> -> vector<1x1xf32>
    %c0_13 = arith.constant 0 : index
    %29 = memref.load %arg3[%c0_13] : memref<1xf32, #tpu.memory_space<smem>>
    %30 = vector.broadcast %29 : f32 to vector<1x1xf32>
    %31 = arith.addf %28, %30 : vector<1x1xf32>
    %c0_14 = arith.constant 0 : index
    %c0_15 = arith.constant 0 : index
    %32 = vector.load %arg4[%c0_14, %c0_15] : memref<1x1xf32, #tpu.memory_space<vmem>>, vector<1x1xf32>
    tpu.vector_store %arg4[%c0_14, %c0_15], %31 {strides = array<i32>} : memref<1x1xf32, #tpu.memory_space<vmem>>, vector<1x1xf32>,
    return
  }
}

</mosaic_0001>

<bundles_post_ra>
// kernel: link_predictor_forward.1
= control target key start
LH: loop header
LB: loop body
LE: loop exit
PB: predicated region body
PF: predicated region fallthrough
CT: control target
= control target key end

     0   :  { %vm36_vm0 = vcmask 261120   ;;  %s643_s0 = inlined_call_operand.vmem [shape: f32[32,32], index: 0, kind: input, shape index: {}]   ;;  %s644_s1 = inlined_call_operand.vmem [shape: f32[32,32], index: 1, kind: input, shape index: {}]   ;;  %s645_s2 = inlined_call_operand.vmem [shape: f32[72,32], index: 2, kind: input, shape index: {}]   ;;  %s646_s3 = inlined_call_operand.<no memory space> [shape: f32[1], index: 3, kind: input, shape index: {}]   ;;  %s647_s4 = inlined_call_operand.hbm [shape: f32[1,1], index: 4, kind: output, shape index: {}]  }
   0x1   :  { %v19_v0 = vld [vmem:[%s645_s2] sm:$0xff]  ;;  %v20_v1 = vld [vmem:[%s645_s2 + $0x8] sm:$0xff]  ;;  %v21_v5 = vld [vmem:[%s645_s2 + $0x10] sm:$0xff] }
   0x2   :  { %v23_v2 = vld [vmem:[%s645_s2 + $0x20] sm:$0xff]  ;;  %v464_v3 = vpack.c.bf16 %v20_v1, %v19_v0  ;;  %v24_v4 = vld [vmem:[%s645_s2 + $0x28] sm:$0xff]  ;;  %v22_v6 = vld [vmem:[%s645_s2 + $0x18] sm:$0xff] }
   0x3   :  { %v472_v7 = vpack.c.bf16 %v24_v4, %v23_v2  ;;  %v468_v8 = vpack.c.bf16 %v22_v6, %v21_v5  ;;  %v25_v9 = vld [vmem:[%s645_s2 + $0x30] sm:$0xff]  ;;  %v26_v10 = vld [vmem:[%s645_s2 + $0x38] sm:$0xff]  ;;  %v28_v11 = vld [vmem:[%s643_s0] sm:$0xff] }
   0x4   :  { %465 = vmatprep.subr.bf16.mxu0 %v464_v3  ;;  %v476_v12 = vpack.c.bf16 %v26_v10, %v25_v9  ;;  %433 = vmatprep.mubr.msk.f32.mxu0 %vm36_vm0, %v28_v11  ;;  %v134_v13 = vld [vmem:[%s644_s1] sm:$0xff] }
   0x5   :  { %473 = vmatprep.subr.bf16.mxu1 %v472_v7  ;;  %467 = vmatpush3.bf16.msra.mxu0 %v464_v3 }
   0x6   :  { %475 = vmatpush3.bf16.msra.mxu1 %v472_v7  ;;  %469 = vmatprep.subr.bf16.mxu0 %v468_v8 }
   0x7   :  { %10 = vsyncpa [#allocation4], 0  ;;  %477 = vmatprep.subr.bf16.mxu1 %v476_v12  ;;  %447 = vmatprep.mubr.msk.f32.mxu1 %vm36_vm0, %v134_v13  ;;  %v29_v14 = vld [vmem:[%s643_s0 + $0x8] sm:$0xff]  ;;  %v30_v16 = vld [vmem:[%s643_s0 + $0x10] sm:$0xff]  ;;  %v32_v20 = vlaneseq  ;;  %v522_v3 = vmov 0.0|0.0   ;;  %vm523_vm1 = vmmov 0  }
   0x8   :  { %v135_v15 = vld [vmem:[%s644_s1 + $0x8] sm:$0xff]  ;;  %v136_v17 = vld [vmem:[%s644_s1 + $0x10] sm:$0xff]  ;;  %v31_v18 = vld [vmem:[%s643_s0 + $0x18] sm:$0xff]  ;;  %v524_v4 = vmov 0.0   ;;  %vm379_vm2 = vcmask 0  }
   0x9   :  { %471 = vmatpush3.bf16.msra.mxu0 %v468_v8  ;;  %v137_v19 = vld [vmem:[%s644_s1 + $0x18] sm:$0xff]  ;;  %v33_v21 = vshrl.u32 %v32_v20, 7  ;;  %v610_v23 = vld [vmem:[%s645_s2 + $0x40] sm:$0xff]  ;;  %s525_s2 = smov [#allocation3]  }
   0xa   :  { %479 = vmatpush3.bf16.msra.mxu1 %v476_v12  ;;  %480 = vmatprep.subr.bf16.mxu0 %v522_v3  ;;  %s387_s23 = sshll.u32 %s525_s2, 4  ;;  %s388_s23 = int_to_ptr.vmem [resolvable:$true] %s387_s23 }
   0xb   :  { %v34_v22 = vsub.s32 0, %v33_v21  ;;  %v140_v24 = vsub.s32 1, %v33_v21  ;;  %s498_s24 = scalar_lea.vmem %s388_s23, 16  ;;  %s502_s25 = scalar_lea.vmem %s388_s23, 32 }
   0xc   :  { %434 = vmatmul.mubr.msk.f32.vlgmr.msra.gmra.mrb[0].mxu0 %vm36_vm0, %v29_v14  ;;  %p499_p0 = scmp.ne.s32.totalorder %s388_s23, %s498_s24  ;;  %p503_p1 = scmp.lt.s32.totalorder %s388_s23, %s388_s23 }
   0xd   :  { %448 = vmatmul.mubr.msk.f32.vlgmr.msra.gmra.mrb[0].mxu1 %vm36_vm0, %v135_v15  ;;  %436 = vmatprep.mubr.msk.f32.mxu0 %vm36_vm0, %v30_v16  ;;  %v35_v25 = vrot.slane %v610_v23, %v34_v22  ;;  %v141_v26 = vrot.slane %v610_v23, %v140_v24  ;;  %p504_p2 = scmp.lt.s32.totalorder %s502_s25, %s498_s24 }
   0xe   :  { %450 = vmatprep.mubr.msk.f32.mxu1 %vm36_vm0, %v136_v17 }
   0xf   :  { %p505_p3 = por %p504_p2, %p503_p1 }
  0x10   :  { %437 = vmatmul.mubr.msk.f32.gmra.mrb[2].mxu0 %vm36_vm0, %v31_v18 }
  0x11   :  { %451 = vmatmul.mubr.msk.f32.gmra.mrb[2].mxu1 %vm36_vm0, %v137_v19  ;;  %461 = vmatprep.mubr.msk.f32.mxu0 %vm523_vm1, %v524_v4  ;;  %p506_p4 = pnand %p505_p3, %p499_p0 }
  0xdf   :  { %v435_v27 = vpop.f32.mrb[0].mxu0 }
  0xe0   :  { %v121_v28 = vadd.f32 %v435_v27, %v35_v25  ;;  %v449_v29 = vpop.f32.mrb[0].mxu1  ;;  %v115_v30 = vpop.f32.mrb[1].mxu0 }
  0xe1   :  { %v226_v31 = vadd.f32 %v449_v29, %v141_v26  ;;  %v116_v32 = vadd.f32 %v115_v30, %v35_v25  ;;  %v220_v33 = vpop.f32.mrb[1].mxu1 }
  0xe2   :  { %v221_v34 = vadd.f32 %v220_v33, %v141_v26  ;;  %v256_v35 = vmul.f32 %v121_v28, %v121_v28 }
  0xe3   :  { %v272_v36 = vmul.f32 %v226_v31, %v226_v31  ;;  %v438_v37 = vpop.f32.mrb[2].mxu0  ;;  %v240_v38 = vmul.f32 %v226_v31, %v121_v28  ;;  %v255_v43 = vmul.f32 %v116_v32, %v116_v32 }
  0xe4   :  { %v452_v39 = vpop.f32.mrb[2].mxu1  ;;  %v262_v40 = vsel %vm36_vm0, %v256_v35, 0.0  ;;  %v131_v41 = vadd.f32 %v438_v37, %v35_v25  ;;  %v125_v42 = vpop.f32.mrb[3].mxu0  ;;  %v239_v44 = vmul.f32 %v221_v34, %v116_v32  ;;  %v271_v49 = vmul.f32 %v221_v34, %v221_v34 }
  0xe5   :  { %v278_v45 = vsel %vm36_vm0, %v272_v36, 0.0  ;;  %v236_v46 = vadd.f32 %v452_v39, %v141_v26  ;;  %263 = vadd.xlane.f32.xlu0 %v262_v40  ;;  %v126_v47 = vadd.f32 %v125_v42, %v35_v25  ;;  %v230_v48 = vpop.f32.mrb[3].mxu1  ;;  %v259_v54 = vsel %vm36_vm0, %v255_v43, 0.0 }
  0xe6   :  { %279 = vadd.xlane.f32.xlu1 %v278_v45  ;;  %v231_v50 = vadd.f32 %v230_v48, %v141_v26  ;;  %v258_v51 = vmul.f32 %v131_v41, %v131_v41  ;;  %v275_v56 = vsel %vm36_vm0, %v271_v49, 0.0  ;;  %v243_v63 = vsel %vm36_vm0, %v239_v44, 0.0 }
  0xe7   :  { %v257_v52 = vmul.f32 %v126_v47, %v126_v47  ;;  %v242_v53 = vmul.f32 %v236_v46, %v131_v41  ;;  %v274_v60 = vmul.f32 %v236_v46, %v236_v46  ;;  %v246_v0 = vsel %vm36_vm0, %v240_v38, 0.0 }
  0xe8   :  { %v241_v55 = vmul.f32 %v231_v50, %v126_v47  ;;  %v273_v58 = vmul.f32 %v231_v50, %v231_v50  ;;  %v268_v59 = vsel %vm36_vm0, %v258_v51, 0.0  ;;  %v306_v36 = vrot.slane %v610_v23, 2 }
  0xe9   :  { %260 = vadd.xlane.f32.xlu0 %v259_v54  ;;  %v265_v57 = vsel %vm36_vm0, %v257_v52, 0.0  ;;  %v284_v62 = vsel %vm36_vm0, %v274_v60, 0.0  ;;  %v252_v2 = vsel %vm36_vm0, %v242_v53, 0.0  ;;  %v304_v37 = vstv %s646_s3 }
  0xea   :  { %276 = vadd.xlane.f32.xlu1 %v275_v56  ;;  %v281_v61 = vsel %vm36_vm0, %v273_v58, 0.0  ;;  %v249_v1 = vsel %vm36_vm0, %v241_v55, 0.0 }
  0xed   :  { %266 = vadd.xlane.f32.xlu0 %v265_v57 }
  0xee   :  { %269 = vadd.xlane.f32.xlu1 %v268_v59 }
  0xf1   :  { %282 = vadd.xlane.f32.xlu0 %v281_v61 }
  0xf2   :  { %285 = vadd.xlane.f32.xlu1 %v284_v62 }
  0xf5   :  { %244 = vadd.xlane.f32.xlu0 %v243_v63 }
  0xf6   :  { %247 = vadd.xlane.f32.xlu1 %v246_v0 }
  0xf9   :  { %250 = vadd.xlane.f32.xlu0 %v249_v1 }
  0xfa   :  { %253 = vadd.xlane.f32.xlu1 %v252_v2 }
 0x172   :  { %v264_v5 = vpop.xlane.xlu0 %263 }
 0x173   :  { %v280_v6 = vpop.xlane.xlu1 %279 }
 0x174   :  { %v288_v7 = vmul.f32 %v280_v6, %v264_v5 }
 0x176   :  { %v292_v8 = vmax.f32 %v288_v7, 1e-16  ;;  %v261_v9 = vpop.xlane.xlu0 %260 }
 0x177   :  { %v277_v10 = vpop.xlane.xlu1 %276 }
 0x178   :  { %v287_v11 = vmul.f32 %v277_v10, %v261_v9  ;;  %490 = vrsqrt.f32 %v292_v8 }
 0x17a   :  { %v291_v12 = vmax.f32 %v287_v11, 1e-16  ;;  %v267_v13 = vpop.xlane.xlu0 %266 }
 0x17b   :  { %v270_v14 = vpop.xlane.xlu1 %269 }
 0x17c   :  { %492 = vrsqrt.f32 %v291_v12 }
 0x17e   :  { %v283_v15 = vpop.xlane.xlu0 %282 }
 0x17f   :  { %v286_v16 = vpop.xlane.xlu1 %285  ;;  %v289_v17 = vmul.f32 %v283_v15, %v267_v13 }
 0x180   :  { %v290_v18 = vmul.f32 %v286_v16, %v270_v14 }
 0x181   :  { %v293_v19 = vmax.f32 %v289_v17, 1e-16 }
 0x182   :  { %v294_v20 = vmax.f32 %v290_v18, 1e-16  ;;  %v491_v21 = vpop.eup %490  ;;  %v245_v25 = vpop.xlane.xlu0 %244 }
 0x183   :  { %494 = vrsqrt.f32 %v293_v19  ;;  %v248_v22 = vpop.xlane.xlu1 %247 }
 0x184   :  { %496 = vrsqrt.f32 %v294_v20  ;;  %v300_v26 = vmul.f32 %v491_v21, %v248_v22 }
 0x186   :  { %v493_v24 = vpop.eup %492  ;;  %v251_v30 = vpop.xlane.xlu0 %250 }
 0x187   :  { %v299_v27 = vmul.f32 %v493_v24, %v245_v25  ;;  %v254_v32 = vpop.xlane.xlu1 %253 }
 0x189   :  { %v481_v28 = vpack.c.bf16 %v300_v26, %v299_v27 }
 0x18b   :  { %482 = vmatpush3.bf16.msra.mxu0 %v481_v28 }
 0x18c   :  { %483 = vmatprep.subr.bf16.mxu0 %v522_v3 }
 0x18d   :  { %v495_v29 = vpop.eup %494 }
 0x18e   :  { %v497_v31 = vpop.eup %496  ;;  %v301_v33 = vmul.f32 %v495_v29, %v251_v30 }
 0x18f   :  { %v302_v34 = vmul.f32 %v497_v31, %v254_v32 }
 0x191   :  { %v484_v35 = vpack.c.bf16 %v302_v34, %v301_v33 }
 0x193   :  { %485 = vmatpush3.bf16.msra.mxu0 %v484_v35 }
 0x196   :  { %462 = vmatmul.mubr.msk.f32.vlgmr.msra.gmra.mrb[4].mxu0 %vm36_vm0, %v306_v36 }
 0x269   :  { %v375_v38 = vpop.f32.mrb[4].mxu0 }
 0x26a   :  { %v376_v39 = vadd.f32 %v375_v38, %v304_v37  ;;  %v463_v40 = vpop.f32.mrb[5].mxu0 }
 0x26c   :  { %380 = vst.msk [vmem:[#allocation3] sm:$0x1] %vm379_vm2, %v376_v39 }
 0x26d   :  { %509 = shalt.err (!%p506_p4)
}
 0x26e   :  { %s510_s3 = scalar_lea.hbm %s647_s4, 16 }
 0x26f   :  { %p511_p5 = scmp.ne.s32.totalorder %s647_s4, %s510_s3  ;;  %p514_p6 = scmp.lt.u32.totalorder %s510_s3, %s647_s4 }
 0x271   :  { %p516_p7 = pnand %p514_p6, %p511_p5 }
 0x273   :  { %519 = shalt.err (!%p516_p7)
}
 0x274   :  { %390 = dma.vmem_to_hbm [thread:$0]  %s388_s23, 16, %s647_s4, [#allocation4]  }
 0x275   :  { %520 = dma.done.wait [#allocation4], 16  }
 0x276   :  { %521 = vsyncadd [#allocation4], 4294967280 }
 0x277   :  { %394 = vsyncpa [#allocation4], 1 }

</bundles_post_ra>
